<compile_context>
chip_gen: v7x
topology: tpu7x:2x2x1
jax: 0.10.0
libtpu: 0.0.40
codegen_flags: <defaults>
</compile_context>

<pallas_src>
import jax
import jax.numpy as jnp
from jax.experimental import pallas as pl
from jax.experimental.pallas import tpu as pltpu


def yolo_decode_kernel(p_ref, rowc_ref, grid_ref, io_ref):
    """Decode one (R, TS) tile (one batch element x one spatial tile).

    rowc columns (per row r, c = r % no):
      0 sign      : +1 on wh rows (c in {2,3}), -1 elsewhere
      1 cap       : 1e30 on wh rows (no clamp), 80 elsewhere (sigmoid-safe)
      2 sig_scale : stride on xy rows, 0 on wh rows, 1 on cls rows
      3 wh_scale  : anchor*stride on wh rows, 0 elsewhere
      4 xmask     : 1 on c==0
      5 ymask     : 1 on c==1
    grid rows: [gx*stride ; gy*stride] for this spatial tile.
    """
    v = p_ref[...].astype(jnp.float32)                 # (R, TS)
    rc = rowc_ref[...]                                 # (R, 6) -- one vreg
    sign = rc[:, 0:1]
    cap = rc[:, 1:2]
    sig_scale = rc[:, 2:3]
    wh_scale = rc[:, 3:4]
    xmask = rc[:, 4:5]
    ymask = rc[:, 5:6]
    g = grid_ref[...]                                  # (2, TS)

    # exp(v) on wh rows (unclamped -> matches torch.exp incl. overflow),
    # exp(-v) clamped elsewhere so 1/(1+e) == sigmoid(v) with no inf*0.
    e = jnp.exp(jnp.minimum(v * sign, cap))            # 1 EUP push / element
    sig = 1.0 / (1.0 + e)                              # sigmoid(v) on non-wh rows

    off = xmask * g[0:1, :] + ymask * g[1:2, :]        # grid offsets on xy rows only
    out = sig * sig_scale + off + e * wh_scale
    io_ref[...] = out.astype(io_ref.dtype)


class YOLOLayer:
    """JAX/Pallas re-implementation of the PyTorch YOLOLayer (eval branch)."""

    def __init__(self, anchors):
        self.anchors = jnp.asarray(anchors, jnp.float32)   # (na, 2)
        self.na = len(anchors)
        self.no = 13

    def __call__(self, p, img_size, return_lane_dense=False):
        bs, c, ny, nx = p.shape
        na, no = self.na, self.no
        assert c == na * no, f"expected {na * no} channels, got {c}"
        R = na * no
        S = ny * nx

        stride = float(max(img_size)) / float(max((nx, ny)))
        anchor_vec = self.anchors / stride                  # (na, 2)

        # ---- lane padding / spatial tiling (lane-dense stores) ----
        S_pad = ((S + 127) // 128) * 128
        if S_pad <= 4096:
            TS = S_pad
        else:
            TS = 128
            for cand in range(4096, 127, -128):
                if S_pad % cand == 0:
                    TS = cand
                    break

        # ---- per-row constants, computed once (tiny, plain JAX) ----
        r = jnp.arange(R)
        c_idx = r % no                                       # prediction channel
        a_idx = r // no                                      # anchor index
        is_wh = (c_idx == 2) | (c_idx == 3)
        is_whf = is_wh.astype(jnp.float32)
        sign = jnp.where(is_wh, 1.0, -1.0).astype(jnp.float32)
        cap = jnp.where(is_wh, 1e30, 80.0).astype(jnp.float32)
        sig_scale = jnp.where(
            c_idx < 2, jnp.float32(stride),
            jnp.where(c_idx < 4, jnp.float32(0.0), jnp.float32(1.0)))
        anchor_rows = anchor_vec[a_idx, jnp.clip(c_idx - 2, 0, 1)]
        wh_scale = is_whf * anchor_rows * jnp.float32(stride)
        xmask = (c_idx == 0).astype(jnp.float32)
        ymask = (c_idx == 1).astype(jnp.float32)
        rowc = jnp.stack([sign, cap, sig_scale, wh_scale, xmask, ymask],
                         axis=1).astype(jnp.float32)         # (R, 6)

        # grid offsets, already scaled by stride: one (2, S_pad) array
        s = jnp.arange(S_pad)
        gxs = (s % nx).astype(jnp.float32) * jnp.float32(stride)   # x = col % nx
        gys = (s // nx).astype(jnp.float32) * jnp.float32(stride)  # y = col // nx
        grid_rows = jnp.stack([gxs, gys], axis=0)            # (2, S_pad)

        # view-reshape only: channels -> sublanes, flattened spatial -> lanes
        p3 = p.reshape(bs, R, S)
        if S_pad != S:
            p3 = jnp.pad(p3, ((0, 0), (0, 0), (0, S_pad - S)))

        io3 = pl.pallas_call(
            yolo_decode_kernel,
            out_shape=jax.ShapeDtypeStruct((bs, R, S_pad), p.dtype),
            grid=(bs, S_pad // TS),
            in_specs=[
                pl.BlockSpec((None, R, TS), lambda b, j: (b, 0, j)),
                pl.BlockSpec((R, 6), lambda b, j: (0, 0)),       # merged row constants
                pl.BlockSpec((2, TS), lambda b, j: (0, j)),      # gx/gy * stride rows
            ],
            out_specs=pl.BlockSpec((None, R, TS), lambda b, j: (b, 0, j)),
            compiler_params=pltpu.CompilerParams(
                dimension_semantics=("parallel", "parallel")),   # megacore on v7x
        )(p3, rowc, grid_rows)

        if S_pad != S:
            io3 = io3[:, :, :S]

        if return_lane_dense:
            # Lane-dense path: no extra HBM passes; consumer gets
            # (bs, na, no, ny*nx) decoded boxes and the raw (bs, na, no, ny*nx) view.
            return (io3.reshape(bs, na, no, S), p3[:, :, :S].reshape(bs, na, no, S))

        # ---- module-contract outputs (channel-last, like the PyTorch code) ----
        # These two transposes are full HBM read+write passes in XLA; they are
        # required by the module's return contract only (see return_lane_dense).
        p_perm = p.reshape(bs, na, no, ny, nx).transpose(0, 1, 3, 4, 2)
        io = io3.reshape(bs, na, no, ny, nx).transpose(0, 1, 3, 4, 2)
        return io.reshape(bs, na * ny * nx, no), p_perm


def yolo_reference(p, anchors, img_size, no=13):
    """Pure-JAX reference mirroring the PyTorch forward (eval branch)."""
    bs, c, ny, nx = p.shape
    na = anchors.shape[0]
    stride = float(max(img_size)) / float(max((nx, ny)))
    anchor_vec = anchors / stride
    pp = p.reshape(bs, na, no, ny, nx).transpose(0, 1, 3, 4, 2)
    yv, xv = jnp.meshgrid(jnp.arange(ny), jnp.arange(nx), indexing="ij")
    grid_xy = jnp.stack((xv, yv), 2).astype(p.dtype).reshape(1, 1, ny, nx, 2)
    anchor_wh = anchor_vec.reshape(1, na, 1, 1, 2).astype(p.dtype)
    xy = (jax.nn.sigmoid(pp[..., :2]) + grid_xy) * stride
    wh = jnp.exp(pp[..., 2:4]) * anchor_wh * stride
    rest = jax.nn.sigmoid(pp[..., 4:])
    io = jnp.concatenate([xy, wh, rest], axis=-1)
    return io.reshape(bs, -1, no), pp


if __name__ == "__main__":
    anchors = [(10.0, 13.0), (16.0, 30.0), (33.0, 23.0)]   # na = 3
    na, no = len(anchors), 13
    bs, ny, nx = 2, 16, 16
    img_size = (128, 128)                                   # stride = 8

    key = jax.random.PRNGKey(0)
    p = jax.random.normal(key, (bs, na * no, ny, nx), dtype=jnp.float32)

    layer = YOLOLayer(anchors)
    io, p_out = layer(p, img_size)
    io = jax.block_until_ready(io)
    p_out = jax.block_until_ready(p_out)

    io_ref, p_ref = yolo_reference(p, jnp.asarray(anchors, jnp.float32),
                                   img_size, no=no)

    assert io.shape == (bs, na * ny * nx, no)
    assert p_out.shape == (bs, na, ny, nx, no)
    assert jnp.allclose(io, io_ref, atol=1e-4, rtol=1e-4)
    assert jnp.allclose(p_out, p_ref, atol=1e-6, rtol=1e-6)

    # lane-dense fast path is consistent with the contract path
    io_ld, _ = layer(p, img_size, return_lane_dense=True)
    io_ld = jax.block_until_ready(io_ld)
    io_ld_chlast = io_ld.reshape(bs, na, no, ny, nx).transpose(0, 1, 3, 4, 2)
    assert jnp.allclose(io_ld_chlast.reshape(bs, -1, no), io_ref,
                        atol=1e-4, rtol=1e-4)

    print("KERNEL_OK")
</pallas_src>

<mosaic_0001>
module attributes {stable_mosaic.version = 11 : i64} {
  func.func @yolo_decode_kernel(%arg0: i32, %arg1: i32, %arg2: memref<1x39x256xf32, #tpu.memory_space<vmem>>, %arg3: memref<39x6xf32, #tpu.memory_space<vmem>>, %arg4: memref<2x256xf32, #tpu.memory_space<vmem>>, %arg5: memref<1x39x256xf32, #tpu.memory_space<vmem>>) attributes {dimension_semantics = [#tpu.dimension_semantics<parallel>, #tpu.dimension_semantics<parallel>], iteration_bounds = array<i64: 2, 1>, scalar_prefetch = 0 : i64, scratch_operands = 0 : i64, tpu.core_type = #tpu.core_type<tc>, window_params = [{transform_indices = @transform_0, window_bounds = array<i64: 1, 39, 256>}, {pipeline_mode = #tpu.pipeline_mode<synchronous>, transform_indices = @transform_1, window_bounds = array<i64: 39, 6>}, {transform_indices = @transform_2, window_bounds = array<i64: 2, 256>}, {transform_indices = @transform_3, window_bounds = array<i64: 1, 39, 256>}]} {
    %c0 = arith.constant 0 : index
    %c0_0 = arith.constant 0 : index
    %c0_1 = arith.constant 0 : index
    %0 = vector.load %arg2[%c0, %c0_0, %c0_1] : memref<1x39x256xf32, #tpu.memory_space<vmem>>, vector<1x39x256xf32>
    %1 = vector.shape_cast %0 : vector<1x39x256xf32> to vector<39x256xf32>
    %c0_2 = arith.constant 0 : index
    %c0_3 = arith.constant 0 : index
    %2 = vector.load %arg3[%c0_2, %c0_3] : memref<39x6xf32, #tpu.memory_space<vmem>>, vector<39x6xf32>
    %3 = vector.extract_strided_slice %2 {offsets = [0, 0], sizes = [39, 1], strides = [1, 1]} : vector<39x6xf32> to vector<39x1xf32>
    %4 = vector.extract_strided_slice %2 {offsets = [0, 1], sizes = [39, 1], strides = [1, 1]} : vector<39x6xf32> to vector<39x1xf32>
    %5 = vector.extract_strided_slice %2 {offsets = [0, 2], sizes = [39, 1], strides = [1, 1]} : vector<39x6xf32> to vector<39x1xf32>
    %6 = vector.extract_strided_slice %2 {offsets = [0, 3], sizes = [39, 1], strides = [1, 1]} : vector<39x6xf32> to vector<39x1xf32>
    %7 = vector.extract_strided_slice %2 {offsets = [0, 4], sizes = [39, 1], strides = [1, 1]} : vector<39x6xf32> to vector<39x1xf32>
    %8 = vector.extract_strided_slice %2 {offsets = [0, 5], sizes = [39, 1], strides = [1, 1]} : vector<39x6xf32> to vector<39x1xf32>
    %c0_4 = arith.constant 0 : index
    %c0_5 = arith.constant 0 : index
    %9 = vector.load %arg4[%c0_4, %c0_5] : memref<2x256xf32, #tpu.memory_space<vmem>>, vector<2x256xf32>
    %10 = vector.broadcast %3 : vector<39x1xf32> to vector<39x256xf32>
    %11 = arith.mulf %1, %10 : vector<39x256xf32>
    %12 = vector.broadcast %4 : vector<39x1xf32> to vector<39x256xf32>
    %13 = arith.minimumf %11, %12 : vector<39x256xf32>
    %14 = math.exp %13 : vector<39x256xf32>
    %cst = arith.constant 1.000000e+00 : f32
    %15 = vector.broadcast %cst : f32 to vector<39x256xf32>
    %16 = arith.addf %15, %14 : vector<39x256xf32>
    %cst_6 = arith.constant 1.000000e+00 : f32
    %17 = vector.broadcast %cst_6 : f32 to vector<39x256xf32>
    %18 = arith.divf %17, %16 : vector<39x256xf32>
    %19 = vector.extract_strided_slice %9 {offsets = [0, 0], sizes = [1, 256], strides = [1, 1]} : vector<2x256xf32> to vector<1x256xf32>
    %20 = vector.broadcast %7 : vector<39x1xf32> to vector<39x256xf32>
    %21 = vector.broadcast %19 : vector<1x256xf32> to vector<39x256xf32>
    %22 = arith.mulf %20, %21 : vector<39x256xf32>
    %23 = vector.extract_strided_slice %9 {offsets = [1, 0], sizes = [1, 256], strides = [1, 1]} : vector<2x256xf32> to vector<1x256xf32>
    %24 = vector.broadcast %8 : vector<39x1xf32> to vector<39x256xf32>
    %25 = vector.broadcast %23 : vector<1x256xf32> to vector<39x256xf32>
    %26 = arith.mulf %24, %25 : vector<39x256xf32>
    %27 = arith.addf %22, %26 : vector<39x256xf32>
    %28 = vector.broadcast %5 : vector<39x1xf32> to vector<39x256xf32>
    %29 = arith.mulf %18, %28 : vector<39x256xf32>
    %30 = arith.addf %29, %27 : vector<39x256xf32>
    %31 = vector.broadcast %6 : vector<39x1xf32> to vector<39x256xf32>
    %32 = arith.mulf %14, %31 : vector<39x256xf32>
    %33 = arith.addf %30, %32 : vector<39x256xf32>
    %c0_7 = arith.constant 0 : index
    %c0_8 = arith.constant 0 : index
    %c0_9 = arith.constant 0 : index
    %34 = vector.load %arg5[%c0_7, %c0_8, %c0_9] : memref<1x39x256xf32, #tpu.memory_space<vmem>>, vector<1x39x256xf32>
    %35 = vector.shape_cast %34 : vector<1x39x256xf32> to vector<39x256xf32>
    %36 = vector.shape_cast %33 : vector<39x256xf32> to vector<1x39x256xf32>
    tpu.vector_store %arg5[%c0_7, %c0_8, %c0_9], %36 {strides = array<i32>} : memref<1x39x256xf32, #tpu.memory_space<vmem>>, vector<1x39x256xf32>,
    return
  }
  func.func @transform_0(%arg0: i32, %arg1: i32) -> (i32, i32, i32) {
    %c0_i32 = arith.constant 0 : i32
    %c0_i32_0 = arith.constant 0 : i32
    return %arg0, %c0_i32, %arg1 : i32, i32, i32
  }
  func.func @transform_1(%arg0: i32, %arg1: i32) -> (i32, i32) {
    %c0_i32 = arith.constant 0 : i32
    %c0_i32_0 = arith.constant 0 : i32
    %c0_i32_1 = arith.constant 0 : i32
    return %c0_i32, %c0_i32_0 : i32, i32
  }
  func.func @transform_2(%arg0: i32, %arg1: i32) -> (i32, i32) {
    %c0_i32 = arith.constant 0 : i32
    %c0_i32_0 = arith.constant 0 : i32
    return %c0_i32, %arg1 : i32, i32
  }
  func.func @transform_3(%arg0: i32, %arg1: i32) -> (i32, i32, i32) {
    %c0_i32 = arith.constant 0 : i32
    %c0_i32_0 = arith.constant 0 : i32
    return %arg0, %c0_i32, %arg1 : i32, i32, i32
  }
}

</mosaic_0001>

<bundles_post_ra>
// kernel: tpu_custom_call.1
= control target key start
LH: loop header
LB: loop body
LE: loop exit
PB: predicated region body
PF: predicated region fallthrough
CT: control target
= control target key end

     0   :  { %s805_s12 = smov 0   ;;  %s807_s13 = smov 0   ;;  %s987_s0 = inlined_call_operand.vmem [shape: f32[2,39,256], index: 0, kind: input, shape index: {}]   ;;  %s988_s1 = inlined_call_operand.vmem [shape: f32[39,6], index: 1, kind: input, shape index: {}]   ;;  %s989_s2 = inlined_call_operand.vmem [shape: f32[2,256], index: 2, kind: input, shape index: {}]   ;;  %s990_s3 = inlined_call_operand.vmem [shape: f32[2,39,256], index: 3, kind: output, shape index: {}]  }
   0x1   :  { %s809_s14 = smov 0  }
   0x2 LB: > { %s25_s15 = sadd.s32 1, %s773_s13  ;;  %p667_p0 = scmp.ge.s32.totalorder %s777_s14, 1  ;;  %s777_s14 = sphi %s809_s14, %s13_s14   ;;  %s773_s13 = sphi %s807_s13, %s992_s13   ;;  %s769_s12 = sphi %s805_s12, %s991_s12  }
   0x3   : > { %p27_p1 = scmp.ge.s32.totalorder %s25_s15, 2  ;;  %p169_p2 = scmp.lt.s32.totalorder %s777_s14, 3 }
   0x5   : > { %s994_s15 = smov (%p27_p1, %s25_s15), 0  ;;  %p170_p3 = pnand %p667_p0, %p169_p2 }
   0x6   : > { %v244_v0 = vld [vmem:[%s988_s1 + $0x10] sm:$0xff] (!%p170_p3)  ;;  %v242_v1 = vld [vmem:[%s988_s1] sm:$0xff] (!%p170_p3)  ;;  %v779_v2 = vmov (!%p170_p3), 0   ;;  %v245_v3 = vld [vmem:[%s988_s1 + $0x18] sm:$0xff] (!%p170_p3)  ;;  %v780_v6 = vmov (!%p170_p3), 1   ;;  %v781_v7 = vmov (!%p170_p3), 4   ;;  %v384_v48 = vlaneseq (!%p170_p3) }
   0x7   : > { %173 = sbr.rel (%p170_p3) target bundleno = 210 (0xd2), region = 32  ;;  %704 = vset.pattern.permute.xlu1 (!%p170_p3), %v779_v2  ;;  %703 = vset.pattern.permute.xlu0 (!%p170_p3), %v779_v2  ;;  %v243_v4 = vld [vmem:[%s988_s1 + $0x8] sm:$0xff] (!%p170_p3)  ;;  %v246_v5 = vld [vmem:[%s988_s1 + $0x20] sm:$0x7f] (!%p170_p3)  ;;  %v782_v8 = vmov (!%p170_p3), 5   ;;  %v783_v9 = vmov (!%p170_p3), 2  }
   0x8   : > { %260 = vperm.xlu1 (!%p170_p3), %704, %v244_v0   ;;  %250 = vperm.xlu0 (!%p170_p3), %703, %v242_v1   ;;  %v784_v10 = vmov (!%p170_p3), 3   ;;  %p207_p4 = scmp.lt.s32.totalorder (!%p170_p3), %s769_s12, 1  ;;  %v385_v58 = vshrl.u32 (!%p170_p3), %v384_v48, 7 }
   0xa   : > { %v386_v2 = vsub.s32 (!%p170_p3), 0, %v385_v58 }
   0xc   : > { %265 = vperm.xlu1 (!%p170_p3), %704, %v245_v3   ;;  %255 = vperm.xlu0 (!%p170_p3), %703, %v243_v4  }
   0xe   : > { %s996_s12 = smov (!%p207_p4, %s769_s12), 1 }
   0xf   : > { %s672_s26 = smul.u32 80, %s996_s12 }
  0x10   : > { %705 = vset.pattern.permute.xlu1 %v780_v6  ;;  %270 = vperm.xlu0 %703, %v246_v5  }
  0x11   : > { %284 = vperm.xlu1 %705, %v242_v1   ;;  %s850_s29 = scalar_lea.vmem %s987_s0, %s672_s26  ;;  %s933_s7 = scalar_lea.vmem %s990_s3, %s672_s26 }
  0x12   : > { %v234_v15 = vld [vmem:[%s850_s29 + $0x10] sm:$0xff]  ;;  %v235_v16 = vld [vmem:[%s850_s29 + $0x18] sm:$0xff]  ;;  %v240_v21 = vld [vmem:[%s850_s29 + $0x40] sm:$0x7f] }
  0x13   : > { %v241_v22 = vld [vmem:[%s850_s29 + $0x48] sm:$0x7f]  ;;  %v232_v23 = vld [vmem:[%s850_s29] sm:$0xff]  ;;  %v238_v51 = vld [vmem:[%s850_s29 + $0x30] sm:$0xff] }
  0x14   : > { %706 = vset.pattern.permute.xlu0 %v780_v6  ;;  %v233_v26 = vld [vmem:[%s850_s29 + $0x8] sm:$0xff]  ;;  %v236_v33 = vld [vmem:[%s850_s29 + $0x20] sm:$0xff]  ;;  %v239_v54 = vld [vmem:[%s850_s29 + $0x38] sm:$0xff] }
  0x15   : > { %292 = vperm.xlu1 %705, %v244_v0   ;;  %288 = vperm.xlu0 %706, %v243_v4   ;;  %v237_v38 = vld [vmem:[%s850_s29 + $0x28] sm:$0xff]  ;;  %v247_v6 = vld [vmem:[%s989_s2] sm:$0xf] }
  0x19   : > { %296 = vperm.xlu1 %705, %v245_v3   ;;  %300 = vperm.xlu0 %706, %v246_v5  }
  0x1d   : > { %707 = vset.pattern.permute.xlu1 %v781_v7  ;;  %708 = vset.pattern.permute.xlu0 %v781_v7  ;;  %v434_v7 = vsub.s32 1, %v385_v58 }
  0x1e   : > { %364 = vperm.xlu1 %707, %v242_v1   ;;  %368 = vperm.xlu0 %708, %v243_v4  }
  0x22   : > { %372 = vperm.xlu1 %707, %v244_v0   ;;  %380 = vperm.xlu0 %708, %v246_v5  }
  0x26   : > { %376 = vperm.xlu1 %707, %v245_v3   ;;  %710 = vset.pattern.permute.xlu0 %v782_v8 }
  0x27   : > { %417 = vperm.xlu0 %710, %v243_v4  }
  0x2a   : > { %709 = vset.pattern.permute.xlu1 %v782_v8  ;;  %v438_v8 = vsub.s32 3, %v385_v58 }
  0x2b   : > { %413 = vperm.xlu1 %709, %v242_v1   ;;  %429 = vperm.xlu0 %710, %v246_v5  }
  0x2f   : > { %421 = vperm.xlu1 %709, %v244_v0   ;;  %712 = vset.pattern.permute.xlu0 %v783_v9 }
  0x30   : > { %475 = vperm.xlu0 %712, %v243_v4  }
  0x33   : > { %425 = vperm.xlu1 %709, %v245_v3  }
  0x34   : > { %487 = vperm.xlu0 %712, %v246_v5  }
  0x37   : > { %711 = vset.pattern.permute.xlu1 %v783_v9 }
  0x38   : > { %471 = vperm.xlu1 %711, %v242_v1   ;;  %714 = vset.pattern.permute.xlu0 %v784_v10 }
  0x39   : > { %515 = vperm.xlu0 %714, %v243_v4  }
  0x3c   : > { %479 = vperm.xlu1 %711, %v244_v0  }
  0x3d   : > { %527 = vperm.xlu0 %714, %v246_v5  }
  0x40   : > { %483 = vperm.xlu1 %711, %v245_v3  }
  0x44   : > { %713 = vset.pattern.permute.xlu1 %v784_v10 }
  0x45   : > { %511 = vperm.xlu1 %713, %v242_v1  }
  0x49   : > { %519 = vperm.xlu1 %713, %v244_v0  }
  0x4d   : > { %523 = vperm.xlu1 %713, %v245_v3   ;;  %v390_v3 = vsub.s32 2, %v385_v58 }
  0x87   : > { %v261_v11 = vpop.permute.xlu1 %260  ;;  %v251_v12 = vpop.permute.xlu0 %250 }
  0x88   : > { %v273_v31 = vmul.f32 %v251_v12, %v232_v23  ;;  %v274_v34 = vmul.f32 %v251_v12, %v233_v26  ;;  %v277_v41 = vmul.f32 %v261_v11, %v236_v33  ;;  %v278_v44 = vmul.f32 %v261_v11, %v237_v38 }
  0x8b   : > { %v266_v13 = vpop.permute.xlu1 %265  ;;  %v256_v14 = vpop.permute.xlu0 %255 }
  0x8c   : > { %v275_v19 = vmul.f32 %v256_v14, %v234_v15  ;;  %v276_v20 = vmul.f32 %v256_v14, %v235_v16  ;;  %v279_v56 = vmul.f32 %v266_v13, %v238_v51  ;;  %v280_v62 = vmul.f32 %v266_v13, %v239_v54 }
  0x8d   : > { %v387_v15 = vrot.slane %v247_v6, %v386_v2 }
  0x8f   : > { %v271_v17 = vpop.permute.xlu0 %270 }
  0x90   : > { %v285_v18 = vpop.permute.xlu1 %284  ;;  %v281_v27 = vmul.f32 %v271_v17, %v240_v21  ;;  %v282_v29 = vmul.f32 %v271_v17, %v241_v22  ;;  %v391_v17 = vrot.slane %v247_v6, %v390_v3 }
  0x91   : > { %v303_v42 = vmin.f32 %v273_v31, %v285_v18  ;;  %v304_v45 = vmin.f32 %v274_v34, %v285_v18  ;;  %v435_v18 = vrot.slane %v247_v6, %v434_v7 }
  0x93   : > { %v313_v53 = vmul.f32 1.442695, %v303_v42  ;;  %v315_v55 = vmul.f32 1.442695, %v304_v45 }
  0x94   : > { %v293_v24 = vpop.permute.xlu1 %292  ;;  %v289_v25 = vpop.permute.xlu0 %288 }
  0x95   : > { %v305_v28 = vmin.f32 %v275_v19, %v289_v25  ;;  %v306_v30 = vmin.f32 %v276_v20, %v289_v25  ;;  %v307_v47 = vmin.f32 %v277_v41, %v293_v24  ;;  %v308_v52 = vmin.f32 %v278_v44, %v293_v24 }
  0x96   : > { %v439_v19 = vrot.slane %v247_v6, %v438_v8  ;;  %v889_v25 = vrot.slane %v387_v15, %v386_v2 }
  0x97   : > { %v317_v32 = vmul.f32 1.442695, %v305_v28  ;;  %v319_v35 = vmul.f32 1.442695, %v306_v30  ;;  %v321_v57 = vmul.f32 1.442695, %v307_v47  ;;  %v895_v28 = vrot.slane %v435_v18, %v434_v7 }
  0x98   : > { %v297_v36 = vpop.permute.xlu1 %296  ;;  %v301_v37 = vpop.permute.xlu0 %300  ;;  %v323_v61 = vmul.f32 1.442695, %v308_v52 }
  0x99   : > { %v311_v39 = vmin.f32 %v281_v27, %v301_v37  ;;  %v312_v40 = vmin.f32 %v282_v29, %v301_v37  ;;  %715 = vpow2.f32 %v317_v32  ;;  %v309_v63 = vmin.f32 %v279_v56, %v297_v36 }
  0x9a   : > { %717 = vpow2.f32 %v319_v35  ;;  %v310_v1 = vmin.f32 %v280_v62, %v297_v36  ;;  %v893_v27 = vrot.slane %v391_v17, %v386_v2  ;;  %v897_v29 = vrot.slane %v439_v19, %v434_v7 }
  0x9b   : > { %v329_v43 = vmul.f32 1.442695, %v311_v39  ;;  %v331_v46 = vmul.f32 1.442695, %v312_v40  ;;  %v325_v11 = vmul.f32 1.442695, %v309_v63 }
  0x9c   : > { %v327_v14 = vmul.f32 1.442695, %v310_v1 }
  0x9d   : > { %v860_v49 = vpop.permute.xlu1 %364  ;;  %v369_v50 = vpop.permute.xlu0 %368  ;;  %719 = vpow2.f32 %v329_v43 }
  0x9e   : > { %721 = vpow2.f32 %v331_v46  ;;  %v404_v34 = vmul.f32 %v889_v25, %v369_v50  ;;  %v405_v35 = vmul.f32 %v893_v27, %v369_v50 }
  0x9f   : > { %723 = vpow2.f32 %v313_v53 }
  0xa0   : > { %725 = vpow2.f32 %v315_v55 }
  0xa1   : > { %v864_v59 = vpop.permute.xlu1 %372  ;;  %v866_v60 = vpop.permute.xlu0 %380  ;;  %727 = vpow2.f32 %v321_v57 }
  0xa2   : > { %729 = vpow2.f32 %v323_v61  ;;  %v410_v53 = vmul.f32 %v889_v25, %v866_v60  ;;  %v411_v55 = vmul.f32 %v893_v27, %v866_v60 }
  0xa3   : > { %v868_v0 = vpop.eup %715 }
  0xa4   : > { %v872_v5 = vpop.eup %717  ;;  %v335_v10 = vadd.f32 1.0, %v868_v0 }
  0xa5   : > { %v870_v4 = vpop.permute.xlu1 %376  ;;  %v336_v12 = vadd.f32 1.0, %v872_v5 }
  0xa6   : > { %v418_v9 = vpop.permute.xlu0 %417  ;;  %731 = vrcp.f32 %v335_v10 }
  0xa7   : > { %v879_v13 = vpop.eup %719  ;;  %733 = vrcp.f32 %v336_v12  ;;  %v452_v36 = vmul.f32 %v895_v28, %v418_v9  ;;  %v453_v37 = vmul.f32 %v897_v29, %v418_v9 }
  0xa8   : > { %v881_v16 = vpop.eup %721  ;;  %v341_v22 = vadd.f32 1.0, %v879_v13  ;;  %735 = vpow2.f32 %v325_v11 }
  0xa9   : > { %v342_v23 = vadd.f32 1.0, %v881_v16  ;;  %v887_v24 = vpop.eup %723  ;;  %v462_v46 = vadd.f32 %v452_v36, %v404_v34  ;;  %v463_v47 = vadd.f32 %v453_v37, %v405_v35  ;;  %v402_v37 = vmul.f32 %v889_v25, %v860_v49 }
  0xaa   : > { %v883_v20 = vpop.permute.xlu1 %413  ;;  %v430_v21 = vpop.permute.xlu0 %429  ;;  %737 = vrcp.f32 %v341_v22  ;;  %v333_v38 = vadd.f32 1.0, %v887_v24 }
  0xab   : > { %739 = vpow2.f32 %v327_v14  ;;  %v891_v26 = vpop.eup %725  ;;  %v458_v56 = vmul.f32 %v895_v28, %v430_v21  ;;  %v459_v57 = vmul.f32 %v897_v29, %v430_v21  ;;  %v450_v21 = vmul.f32 %v895_v28, %v883_v20 }
  0xac   : > { %741 = vrcp.f32 %v342_v23  ;;  %v901_v31 = vpop.eup %727  ;;  %v334_v41 = vadd.f32 1.0, %v891_v26  ;;  %v451_v22 = vmul.f32 %v897_v29, %v883_v20 }
  0xad   : > { %v903_v33 = vpop.eup %729  ;;  %v337_v44 = vadd.f32 1.0, %v901_v31  ;;  %743 = vrcp.f32 %v333_v38  ;;  %v468_v9 = vadd.f32 %v458_v56, %v410_v53  ;;  %v469_v10 = vadd.f32 %v459_v57, %v411_v55 }
  0xae   : > { %v899_v30 = vpop.permute.xlu1 %421  ;;  %v338_v45 = vadd.f32 1.0, %v903_v33  ;;  %745 = vrcp.f32 %v334_v41 }
  0xaf   : > { %v476_v32 = vpop.permute.xlu0 %475  ;;  %747 = vrcp.f32 %v337_v44  ;;  %v454_v41 = vmul.f32 %v895_v28, %v899_v30  ;;  %v455_v20 = vmul.f32 %v897_v29, %v899_v30  ;;  %v406_v44 = vmul.f32 %v889_v25, %v864_v59 }
  0xb0   : > { %v732_v39 = vpop.eup %731  ;;  %749 = vrcp.f32 %v338_v45  ;;  %v407_v45 = vmul.f32 %v893_v27, %v864_v59 }
  0xb1   : > { %v734_v42 = vpop.eup %733  ;;  %v492_v48 = vmul.f32 %v732_v39, %v476_v32  ;;  %v464_v30 = vadd.f32 %v454_v41, %v406_v44 }
  0xb2   : > { %v910_v40 = vpop.permute.xlu1 %425  ;;  %v493_v50 = vmul.f32 %v734_v42, %v476_v32  ;;  %v915_v51 = vpop.eup %735  ;;  %v460_v42 = vadd.f32 %v450_v21, %v402_v37  ;;  %v465_v56 = vadd.f32 %v455_v20, %v407_v45 }
  0xb3   : > { %v488_v43 = vpop.permute.xlu0 %487  ;;  %v502_v62 = vadd.f32 %v492_v48, %v462_v46  ;;  %v339_v2 = vadd.f32 1.0, %v915_v51  ;;  %v456_v57 = vmul.f32 %v895_v28, %v910_v40  ;;  %v457_v59 = vmul.f32 %v897_v29, %v910_v40 }
  0xb4   : > { %v738_v52 = vpop.eup %737  ;;  %v503_v63 = vadd.f32 %v493_v50, %v463_v47 }
  0xb5   : > { %v919_v54 = vpop.eup %739  ;;  %v498_v3 = vmul.f32 %v738_v52, %v488_v43  ;;  %751 = vrcp.f32 %v339_v2 }
  0xb6   : > { %v742_v61 = vpop.eup %741  ;;  %v340_v60 = vadd.f32 1.0, %v919_v54 }
  0xb7   : > { %v472_v58 = vpop.permute.xlu1 %471  ;;  %v499_v6 = vmul.f32 %v742_v61, %v488_v43  ;;  %v744_v19 = vpop.eup %743 }
  0xb8   : > { %v516_v1 = vpop.permute.xlu0 %515  ;;  %753 = vrcp.f32 %v340_v60  ;;  %v746_v35 = vpop.eup %745 }
  0xb9   : > { %v532_v7 = vmul.f32 %v868_v0, %v516_v1  ;;  %v533_v8 = vmul.f32 %v872_v5, %v516_v1  ;;  %v508_v0 = vadd.f32 %v498_v3, %v468_v9  ;;  %v509_v17 = vadd.f32 %v499_v6, %v469_v10  ;;  %v748_v36 = vpop.eup %747 }
  0xba   : > { %v491_v38 = vmul.f32 %v746_v35, %v472_v58  ;;  %v750_v39 = vpop.eup %749 }
  0xbb   : > { %v542_v11 = vadd.f32 %v532_v7, %v502_v62  ;;  %v543_v12 = vadd.f32 %v533_v8, %v503_v63  ;;  %v480_v14 = vpop.permute.xlu1 %479  ;;  %v408_v63 = vmul.f32 %v889_v25, %v870_v4 }
  0xbc   : > { %v528_v15 = vpop.permute.xlu0 %527  ;;  %v495_v46 = vmul.f32 %v750_v39, %v480_v14 }
  0xbd   : > { %552 = vst [vmem:[%s933_s7 + $0x10] sm:$0xff] %v542_v11  ;;  %553 = vst [vmem:[%s933_s7 + $0x18] sm:$0xff] %v543_v12  ;;  %v538_v5 = vmul.f32 %v879_v13, %v528_v15  ;;  %v539_v18 = vmul.f32 %v881_v16, %v528_v15  ;;  %v403_v13 = vmul.f32 %v893_v27, %v860_v49 }
  0xbe   : > { %v490_v16 = vmul.f32 %v744_v19, %v472_v58  ;;  %v494_v49 = vmul.f32 %v748_v36, %v480_v14  ;;  %v505_v1 = vadd.f32 %v495_v46, %v465_v56  ;;  %v466_v40 = vadd.f32 %v456_v57, %v408_v63 }
  0xbf   : > { %v548_v23 = vadd.f32 %v538_v5, %v508_v0  ;;  %v549_v32 = vadd.f32 %v539_v18, %v509_v17  ;;  %v484_v34 = vpop.permute.xlu1 %483  ;;  %v461_v43 = vadd.f32 %v451_v22, %v403_v13  ;;  %v752_v55 = vpop.eup %751 }
  0xc0   : > { %v500_v48 = vadd.f32 %v490_v16, %v460_v42  ;;  %v496_v3 = vmul.f32 %v752_v55, %v484_v34 }
  0xc1   : > { %558 = vst [vmem:[%s933_s7 + $0x40] sm:$0x7f] %v548_v23  ;;  %559 = vst [vmem:[%s933_s7 + $0x48] sm:$0x7f] %v549_v32  ;;  %v501_v50 = vadd.f32 %v491_v38, %v461_v43 }
  0xc2   : > { %v754_v62 = vpop.eup %753 }
  0xc3   : > { %v497_v6 = vmul.f32 %v754_v62, %v484_v34 }
  0xc4   : > { %v512_v47 = vpop.permute.xlu1 %511 }
  0xc5   : > { %v530_v52 = vmul.f32 %v887_v24, %v512_v47  ;;  %v531_v53 = vmul.f32 %v891_v26, %v512_v47  ;;  %v409_v24 = vmul.f32 %v893_v27, %v870_v4  ;;  %v504_v26 = vadd.f32 %v494_v49, %v464_v30 }
  0xc6   : > { %v506_v27 = vadd.f32 %v496_v3, %v466_v40 }
  0xc7   : > { %v540_v58 = vadd.f32 %v530_v52, %v500_v48  ;;  %v541_v61 = vadd.f32 %v531_v53, %v501_v50  ;;  %v467_v25 = vadd.f32 %v457_v59, %v409_v24 }
  0xc8   : > { %v520_v2 = vpop.permute.xlu1 %519 }
  0xc9   : > { %550 = vst [vmem:[%s933_s7] sm:$0xff] %v540_v58  ;;  %551 = vst [vmem:[%s933_s7 + $0x8] sm:$0xff] %v541_v61  ;;  %v534_v28 = vmul.f32 %v901_v31, %v520_v2  ;;  %v535_v29 = vmul.f32 %v903_v33, %v520_v2  ;;  %v507_v60 = vadd.f32 %v497_v6, %v467_v25 }
  0xcb   : > { %v544_v7 = vadd.f32 %v534_v28, %v504_v26  ;;  %v545_v8 = vadd.f32 %v535_v29, %v505_v1 }
  0xcc   : > { %v524_v4 = vpop.permute.xlu1 %523 }
  0xcd   : > { %554 = vst [vmem:[%s933_s7 + $0x20] sm:$0xff] %v544_v7  ;;  %555 = vst [vmem:[%s933_s7 + $0x28] sm:$0xff] %v545_v8  ;;  %v536_v9 = vmul.f32 %v915_v51, %v524_v4  ;;  %v537_v10 = vmul.f32 %v919_v54, %v524_v4 }
  0xcf   : > { %v546_v11 = vadd.f32 %v536_v9, %v506_v27  ;;  %v547_v12 = vadd.f32 %v537_v10, %v507_v60 }
  0xd1   : > { %556 = vst [vmem:[%s933_s7 + $0x30] sm:$0xff] %v546_v11  ;;  %557 = vst [vmem:[%s933_s7 + $0x38] sm:$0xff] %v547_v12 }
  0xd2 PF: > { %s13_s14 = sadd.s32 1, %s777_s14   ;;  %s991_s12 = smov %s773_s13 }
  0xd3   : > { %p10_p5 = scmp.ge.s32.totalorder %s13_s14, 4   ;;  %s992_s13 = smov %s994_s15 }
  0xd5   :  { %12 = sbr.rel (!%p10_p5) target bundleno = 2 (0x2), region = 65 }

</bundles_post_ra>
